<compile_context>
chip_gen: v7x
topology: tpu7x:2x2x1
jax: 0.10.0
libtpu: 0.0.40
codegen_flags: <defaults>
</compile_context>

<pallas_src>
import jax
import jax.numpy as jnp
from jax.experimental import pallas as pl
from jax.experimental.pallas import tpu as pltpu


def _ceil_div(a, b):
    return (a + b - 1) // b


def _round_up(x, m):
    return _ceil_div(x, m) * m


_TM_DEFAULT = 512            # target rows per M tile for large inputs
_SMALL_M_SINGLE_TILE = 256   # below this, one grid step is cheapest


def _choose_tm(m):
    """Pick the M tile size.

    Small M  -> one tile (grid=(1,)): fixed per-step overhead dominates tiny
                problems, so skip the M split entirely.
    Large M  -> ~512-row tiles with an EVEN number of tiles, so both v7x
                TensorCores get balanced work under ("parallel",) semantics.
    """
    if m <= _SMALL_M_SINGLE_TILE:
        return _round_up(m, 16)              # bf16 sublane packing
    tiles = _ceil_div(m, _TM_DEFAULT)
    if tiles % 2:
        tiles += 1                           # even grid length (v7x megacore)
    return _round_up(_ceil_div(m, tiles), 16)


def _vmem_limit_bytes(block_bytes):
    """Per-generation VMEM scope: ~3/4 of physical, capped at 100 MiB."""
    try:
        phys = int(pltpu.get_tpu_info().vmem_capacity_bytes)
    except Exception:
        phys = 64 << 20                      # conservative default (v7x physical)
    cap = min((phys * 3) // 4, 100 << 20)    # ~48 MiB on v7x, ~96 MiB on v5e/v6e
    return int(min(max(2 * block_bytes, 32 << 20), cap))


def _patch_embed_kernel(x_ref, w_ref, b_ref, o_ref):
    """One (tm, N_pad) output tile: full-K MXU matmul (f32 acc) + f32 bias,
    cast to the output dtype at the store."""
    o_ref[...] = (
        jnp.dot(x_ref[...], w_ref[...], preferred_element_type=jnp.float32)
        + b_ref[...]
    ).astype(o_ref.dtype)


def _patch_matmul(patches, w, b2d, *, tm, out_dtype):
    """patches: (M, K) bf16 — K unpadded (full-dim block, exempt from the
    128-lane rule); w: (K, N_pad) bf16; b2d: (1, N_pad) f32.

    Returns (M, N_pad) out_dtype.  1-D grid over M tiles (ragged last tile is
    masked by Pallas); weight and bias stay VMEM-resident (constant block idx).
    """
    m, k = patches.shape
    _, n_pad = w.shape
    assert n_pad % 128 == 0 and tm % 16 == 0

    grid = (_ceil_div(m, tm),)
    out_bytes = jnp.dtype(out_dtype).itemsize

    # Rough per-step VMEM need (double-buffered in/out + resident W/bias;
    # constant-index W is effectively single-buffered, so 2x is conservative).
    block_bytes = (
        2 * tm * k * 2                # patches tiles (bf16, double-buffered)
        + 2 * tm * n_pad * out_bytes  # output tiles (double-buffered)
        + 2 * k * n_pad * 2           # resident weight (bf16)
        + 2 * n_pad * 4               # resident bias (f32)
    )

    return pl.pallas_call(
        _patch_embed_kernel,
        out_shape=jax.ShapeDtypeStruct((m, n_pad), out_dtype),
        grid_spec=pltpu.PrefetchScalarGridSpec(
            num_scalar_prefetch=0,
            grid=grid,
            in_specs=[
                pl.BlockSpec((tm, k), lambda i: (i, 0)),      # patches tile
                pl.BlockSpec((k, n_pad), lambda i: (0, 0)),   # resident W
                pl.BlockSpec((1, n_pad), lambda i: (0, 0)),   # resident bias
            ],
            out_specs=pl.BlockSpec((tm, n_pad), lambda i: (i, 0)),
        ),
        compiler_params=pltpu.CompilerParams(
            dimension_semantics=("parallel",),
            vmem_limit_bytes=_vmem_limit_bytes(block_bytes),
            # Let XLA fuse the im2col transpose into the patches input DMA.
            allow_input_fusion=[True, False, False],
        ),
    )(patches, w, b2d)


class PatchEmbedPallas:
    """Mirrors torch PatchEmbed: Conv2d(in_chans, embed_dim, k=p, s=p),
    flatten(2).transpose(1, 2) -> (B, num_patches, embed_dim)."""

    def __init__(self, img_size=16, patch_size=4, in_chans=4, embed_dim=32,
                 out_dtype=jnp.float32, key=jax.random.PRNGKey(0)):
        self.img_size = (img_size, img_size) if isinstance(img_size, int) else img_size
        self.patch_size = (patch_size, patch_size) if isinstance(patch_size, int) else patch_size
        self.in_chans = in_chans
        self.embed_dim = embed_dim
        self.out_dtype = out_dtype
        self.num_patches = (self.img_size[1] // self.patch_size[1]) * (
            self.img_size[0] // self.patch_size[0]
        )
        kw, kb = jax.random.split(key)
        ph, pw = self.patch_size
        # Conv2d weight (embed_dim, in_chans, ph, pw), bias (embed_dim,)
        fan_in = in_chans * ph * pw
        bound = 1.0 / (fan_in ** 0.5)
        self.weight = jax.random.uniform(
            kw, (embed_dim, in_chans, ph, pw), jnp.float32, -bound, bound
        )
        self.bias = jax.random.uniform(kb, (embed_dim,), jnp.float32, -bound, bound)

    def __call__(self, x):
        # x: (B, C, H, W)
        B, C, H, W = x.shape
        assert H == self.img_size[0] and W == self.img_size[1], (
            f"Input image size ({H}x{W}) doesn't match model "
            f"({self.img_size[0]}x{self.img_size[1]})."
        )
        ph, pw = self.patch_size
        gh, gw = H // ph, W // pw
        M = B * gh * gw
        K = C * ph * pw
        N = self.embed_dim

        # Cast BEFORE the im2col transpose so any materialized pre-pass moves
        # bf16 bytes, not f32.  Flatten order (c, ph, pw) matches the
        # flattened Conv2d weight.
        # TODO(synk): verify in xprof that this transpose fuses into the Pallas
        # input DMA (allow_input_fusion); otherwise gather patches in-kernel.
        xb = x.astype(jnp.bfloat16)
        patches = xb.reshape(B, C, gh, ph, gw, pw)
        patches = patches.transpose(0, 2, 4, 1, 3, 5)   # (B, gh, gw, C, ph, pw)
        patches = patches.reshape(M, K)                  # no K or M padding

        # Conv weight (N, C, ph, pw) -> (K, N), pad only N (lane-dense stores).
        n_pad = _round_up(N, 128)
        w = self.weight.reshape(N, K).T
        w_p = jnp.pad(w, ((0, 0), (0, n_pad - N))).astype(jnp.bfloat16)
        b_p = jnp.pad(self.bias, (0, n_pad - N)).reshape(1, n_pad).astype(jnp.float32)

        tm = _choose_tm(M)
        out = _patch_matmul(patches, w_p, b_p, tm=tm, out_dtype=self.out_dtype)
        return out[:, :N].reshape(B, gh * gw, N)


def _ref_forward(model, x, p):
    """Pure-JAX f32 reference of the same conv-as-matmul semantics."""
    B, C, H, W = x.shape
    gh, gw = H // p, W // p
    pr = x.reshape(B, C, gh, p, gw, p).transpose(0, 2, 4, 1, 3, 5)
    pr = pr.reshape(B * gh * gw, C * p * p)
    r = pr @ model.weight.reshape(model.embed_dim, -1).T + model.bias
    return r.reshape(B, gh * gw, model.embed_dim)


if __name__ == "__main__":
    key = jax.random.PRNGKey(0)
    k_x, k_p, k_x2, k_p2 = jax.random.split(key, 4)

    # Config 1: small DiT-style latent — B=2, C=4, 16x16, patch 4, embed 32.
    # Exercises the small-M single-tile fast path (grid=(1,)).
    B, C, H, W, patch, embed = 2, 4, 16, 16, 4, 32
    x = jax.random.normal(k_x, (B, C, H, W), jnp.float32)
    model = PatchEmbedPallas(img_size=H, patch_size=patch, in_chans=C,
                             embed_dim=embed, key=k_p)
    out = jax.block_until_ready(jax.jit(model.__call__)(x))
    ref = _ref_forward(model, x, patch)
    assert out.shape == (B, (H // patch) * (W // patch), embed), out.shape
    # bf16 inputs with f32 accumulation -> loosened tolerance vs. f32 ref.
    assert jnp.allclose(out, ref, atol=5e-2, rtol=5e-2), float(
        jnp.max(jnp.abs(out - ref))
    )

    # Config 2: B=2, C=4, 32x32, patch 2, embed 64 -> M=512, multi-tile path
    # (2 grid steps, even grid length).
    B2, C2, H2, patch2, embed2 = 2, 4, 32, 2, 64
    x2 = jax.random.normal(k_x2, (B2, C2, H2, H2), jnp.float32)
    model2 = PatchEmbedPallas(img_size=H2, patch_size=patch2, in_chans=C2,
                              embed_dim=embed2, key=k_p2)
    out2 = jax.block_until_ready(jax.jit(model2.__call__)(x2))
    ref2 = _ref_forward(model2, x2, patch2)
    assert out2.shape == (B2, (H2 // patch2) ** 2, embed2), out2.shape
    assert jnp.allclose(out2, ref2, atol=5e-2, rtol=5e-2), float(
        jnp.max(jnp.abs(out2 - ref2))
    )

    print("KERNEL_OK")
</pallas_src>

<mosaic_0001>
module attributes {stable_mosaic.version = 11 : i64} {
  func.func @_patch_embed_kernel(%arg0: i32, %arg1: memref<32x64xbf16, #tpu.memory_space<vmem>>, %arg2: memref<64x128xbf16, #tpu.memory_space<vmem>>, %arg3: memref<1x128xf32, #tpu.memory_space<vmem>>, %arg4: memref<32x128xf32, #tpu.memory_space<vmem>>) attributes {dimension_semantics = [#tpu.dimension_semantics<parallel>], iteration_bounds = array<i64: 1>, scalar_prefetch = 0 : i64, scratch_operands = 0 : i64, tpu.core_type = #tpu.core_type<tc>, window_params = [{transform_indices = @transform_0, window_bounds = array<i64: 32, 64>}, {pipeline_mode = #tpu.pipeline_mode<synchronous>, transform_indices = @transform_1, window_bounds = array<i64: 64, 128>}, {pipeline_mode = #tpu.pipeline_mode<synchronous>, transform_indices = @transform_2, window_bounds = array<i64: 1, 128>}, {transform_indices = @transform_3, window_bounds = array<i64: 32, 128>}]} {
    %c0 = arith.constant 0 : index
    %c0_0 = arith.constant 0 : index
    %0 = vector.load %arg1[%c0, %c0_0] : memref<32x64xbf16, #tpu.memory_space<vmem>>, vector<32x64xbf16>
    %c0_1 = arith.constant 0 : index
    %c0_2 = arith.constant 0 : index
    %1 = vector.load %arg2[%c0_1, %c0_2] : memref<64x128xbf16, #tpu.memory_space<vmem>>, vector<64x128xbf16>
    %cst = arith.constant dense<0.000000e+00> : vector<32x128xf32>
    %2 = tpu.matmul %0, %1, %cst {dimension_numbers = #tpu.dot_dimension_numbers<[1], [0], [0], [1], [0, 0, 1, 1], [], []>} : vector<32x64xbf16>, vector<64x128xbf16>, vector<32x128xf32> -> vector<32x128xf32>
    %c0_3 = arith.constant 0 : index
    %c0_4 = arith.constant 0 : index
    %3 = vector.load %arg3[%c0_3, %c0_4] : memref<1x128xf32, #tpu.memory_space<vmem>>, vector<1x128xf32>
    %4 = vector.broadcast %3 : vector<1x128xf32> to vector<32x128xf32>
    %5 = arith.addf %2, %4 : vector<32x128xf32>
    %c0_5 = arith.constant 0 : index
    %c0_6 = arith.constant 0 : index
    %6 = vector.load %arg4[%c0_5, %c0_6] : memref<32x128xf32, #tpu.memory_space<vmem>>, vector<32x128xf32>
    tpu.vector_store %arg4[%c0_5, %c0_6], %5 {strides = array<i32>} : memref<32x128xf32, #tpu.memory_space<vmem>>, vector<32x128xf32>,
    return
  }
  func.func @transform_0(%arg0: i32) -> (i32, i32) {
    %c0_i32 = arith.constant 0 : i32
    %c0_i32_0 = arith.constant 0 : i32
    return %arg0, %c0_i32 : i32, i32
  }
  func.func @transform_1(%arg0: i32) -> (i32, i32) {
    %c0_i32 = arith.constant 0 : i32
    %c0_i32_0 = arith.constant 0 : i32
    %c0_i32_1 = arith.constant 0 : i32
    return %c0_i32, %c0_i32_0 : i32, i32
  }
  func.func @transform_2(%arg0: i32) -> (i32, i32) {
    %c0_i32 = arith.constant 0 : i32
    %c0_i32_0 = arith.constant 0 : i32
    %c0_i32_1 = arith.constant 0 : i32
    return %c0_i32, %c0_i32_0 : i32, i32
  }
  func.func @transform_3(%arg0: i32) -> (i32, i32) {
    %c0_i32 = arith.constant 0 : i32
    %c0_i32_0 = arith.constant 0 : i32
    return %arg0, %c0_i32 : i32, i32
  }
}

</mosaic_0001>

<bundles_post_ra>
// kernel: a_call__.1
= control target key start
LH: loop header
LB: loop body
LE: loop exit
PB: predicated region body
PF: predicated region fallthrough
CT: control target
= control target key end

     0   :  { %vm69_vm0 = vcmask 523264   ;;  %s261_s0 = inlined_call_operand.vmem [shape: bf16[32,64], index: 0, kind: input, shape index: {}]   ;;  %s262_s1 = inlined_call_operand.vmem [shape: bf16[64,128], index: 1, kind: input, shape index: {}]   ;;  %s263_s2 = inlined_call_operand.vmem [shape: f32[1,128], index: 2, kind: input, shape index: {}]   ;;  %s264_s3 = inlined_call_operand.hbm [shape: f32[32,128], index: 3, kind: output, shape index: {}]  }
   0x1   :  { %v175_v0 = vld [vmem:[%s262_s1] sm:$0xff]   ;;  %v176_v1 = vld [vmem:[%s262_s1 + $0x8] sm:$0xff]   ;;  %v177_v2 = vld [vmem:[%s262_s1 + $0x10] sm:$0xff]  }
   0x2   :  { %160 = vmatprep.subr.bf16.mxu0 %v175_v0  ;;  %v179_v3 = vld [vmem:[%s261_s0] sm:$0xff]  }
   0x3   :  { %161 = vmatpush3.bf16.msra.mxu0 %v175_v0  ;;  %168 = vmatprep.mubr.msk.bf16.mxu0 %vm69_vm0, %v179_v3 }
   0x4   :  { %162 = vmatprep.subr.bf16.mxu0 %v176_v1 }
   0x5   :  { %8 = vsyncpa [#allocation3], 0  ;;  %v178_v4 = vld [vmem:[%s262_s1 + $0x18] sm:$0xff]   ;;  %v180_v5 = vld [vmem:[%s261_s0 + $0x8] sm:$0xff]   ;;  %s205_s26 = smov [#allocation2]  }
   0x6   :  { %v145_v6 = vld [vmem:[%s263_s2] ss:$0 sm:$0xff]  ;;  %s134_s27 = sshll.u32 %s205_s26, 4  ;;  %s135_s27 = int_to_ptr.vmem [resolvable:$true] %s134_s27 }
   0x7   :  { %163 = vmatpush3.bf16.msra.mxu0 %v176_v1  ;;  %s181_s0 = scalar_lea.vmem %s135_s27, 512  ;;  %p186_p1 = scmp.lt.s32.totalorder %s135_s27, %s135_s27 }
   0x8   :  { %164 = vmatprep.subr.bf16.mxu0 %v177_v2  ;;  %p182_p0 = scmp.ne.s32.totalorder %s135_s27, %s181_s0  ;;  %p187_p2 = scmp.lt.s32.totalorder %s181_s0, %s181_s0 }
   0xa   :  { %p188_p3 = por %p187_p2, %p186_p1 }
   0xb   :  { %165 = vmatpush3.bf16.msra.mxu0 %v177_v2 }
   0xc   :  { %166 = vmatprep.subr.bf16.mxu0 %v178_v4  ;;  %p189_p4 = pnand %p188_p3, %p182_p0 }
   0xf   :  { %167 = vmatpush3.bf16.msra.mxu0 %v178_v4 }
  0x12   :  { %169 = vmatmul.mubr.msk.bf16.vlgmr.msra.gmra.mrb[0].mxu0 %vm69_vm0, %v180_v5 }
  0xe5   :  { %v170_v7 = vpop.f32.mrb[0].mxu0 }
  0xe6   :  { %v119_v8 = vadd.f32 %v170_v7, %v145_v6  ;;  %v110_v9 = vpop.f32.mrb[1].mxu0 }
  0xe7   :  { %v111_v10 = vadd.f32 %v145_v6, %v110_v9  ;;  %v171_v11 = vpop.f32.mrb[2].mxu0 }
  0xe8   :  { %127 = vst [vmem:[#allocation2 + $0x10] sm:$0xff] %v119_v8  ;;  %v122_v12 = vadd.f32 %v171_v11, %v145_v6  ;;  %v113_v13 = vpop.f32.mrb[3].mxu0 }
  0xe9   :  { %125 = vst [vmem:[#allocation2] sm:$0xff] %v111_v10  ;;  %v114_v14 = vadd.f32 %v145_v6, %v113_v13 }
  0xea   :  { %128 = vst [vmem:[#allocation2 + $0x18] sm:$0xff] %v122_v12 }
  0xeb   :  { %126 = vst [vmem:[#allocation2 + $0x8] sm:$0xff] %v114_v14 }
  0xec   :  { %192 = shalt.err (!%p189_p4)
}
  0xed   :  { %s193_s28 = scalar_lea.hbm %s264_s3, 512 }
  0xee   :  { %p194_p5 = scmp.ne.s32.totalorder %s264_s3, %s193_s28  ;;  %p197_p6 = scmp.lt.u32.totalorder %s193_s28, %s264_s3 }
  0xf0   :  { %p199_p7 = pnand %p197_p6, %p194_p5 }
  0xf2   :  { %202 = shalt.err (!%p199_p7)
}
  0xf3   :  { %s206_s6 = smov 128   ;;  %s207_s7 = smov 8  }
  0xf4   :  { %140 = dma.vmem_to_hbm [thread:$0]  %s135_s27, 512, %s264_s3, [#allocation3], %s206_s6, %s206_s6, %s207_s7  }
  0xf5   :  { %203 = dma.done.wait [#allocation3], 512  }
  0xf6   :  { %204 = vsyncadd [#allocation3], 4294966784 }
  0xf7   :  { %144 = vsyncpa [#allocation3], 1 }

</bundles_post_ra>
